<compile_context>
chip_gen: v7x
topology: tpu7x:2x2x1
jax: 0.10.0
libtpu: 0.0.40
codegen_flags: <defaults>
</compile_context>

<pallas_src>
import functools
import math

import jax
import jax.numpy as jnp
import numpy as np
from jax.experimental import pallas as pl
from jax.experimental.pallas import tpu as pltpu

NUM_CLASSES = 3  # DiceLoss default


def _partial_sums_kernel(logits_ref, labels_ref, inter_ref, card_ref, ce_ref,
                         *, num_classes, tile_rows, tiles_per_split,
                         valid_rows, needs_mask):
    """Per-image partial sums for CE / Dice intersection / cardinality.

    Block shapes seen by the kernel:
      logits_ref: (C, TR, L)      labels_ref: (TR, L) int
      inter_ref / card_ref: (C, L)   ce_ref: (1, L)   (resident accumulators)
    Grid: (split, N, tiles_per_split); axis 2 is the row-tile reduction axis.
    """
    t = pl.program_id(2)

    @pl.when(t == 0)
    def _():
        inter_ref[...] = jnp.zeros_like(inter_ref)
        card_ref[...] = jnp.zeros_like(card_ref)
        ce_ref[...] = jnp.zeros_like(ce_ref)

    logits = logits_ref[...].astype(jnp.float32)   # (C, TR, L)
    labels = labels_ref[...].astype(jnp.int32)     # (TR, L)

    valid = None
    if needs_mask:
        # The last row tile over-covers the image; rows >= valid_rows are
        # Pallas' implicit (garbage) padding.  Zero those logits *before* any
        # exp/log so nothing non-finite can propagate into the masked sums.
        row0 = (pl.program_id(0) * tiles_per_split + t) * tile_rows
        row_ids = row0 + jax.lax.broadcasted_iota(jnp.int32, labels.shape, 0)
        valid = row_ids < valid_rows                               # (TR, L) bool
        logits = jnp.where(valid[None, :, :], logits, 0.0)

    # softmax pieces over the class axis (axis 0)
    m = jnp.max(logits, axis=0)                     # (TR, L)
    e = jnp.exp(logits - m[None, :, :])             # (C, TR, L)
    s = jnp.sum(e, axis=0)                          # (TR, L)
    inv_s = 1.0 / s
    logsumexp = jnp.log(s) + m                      # (TR, L)

    # per-pixel cross entropy: logsumexp - logit[label], via C unrolled selects
    logit_true = jnp.zeros_like(logsumexp)
    for c in range(num_classes):
        logit_true = jnp.where(labels == c, logits[c], logit_true)
    ce = logsumexp - logit_true
    if needs_mask:
        ce = jnp.where(valid, ce, 0.0)
    ce_ref[...] += jnp.sum(ce, axis=0, keepdims=True)              # (1, L)

    # Dice partial sums, one class at a time — no (C, TR, L) probas / one-hot
    # float temporaries are materialized.
    inter_parts, card_parts = [], []
    for c in range(num_classes):
        p_c = e[c] * inv_s                           # (TR, L) class-c probability
        hit = labels == c                            # (TR, L) bool
        if needs_mask:
            p_c = jnp.where(valid, p_c, 0.0)
            hit = jnp.logical_and(hit, valid)
        inter_parts.append(jnp.sum(jnp.where(hit, p_c, 0.0),
                                   axis=0, keepdims=True))
        card_parts.append(jnp.sum(p_c, axis=0, keepdims=True)
                          + jnp.sum(jnp.where(hit, 1.0, 0.0),
                                    axis=0, keepdims=True))
    inter_ref[...] += jnp.concatenate(inter_parts, axis=0)         # (C, L)
    card_ref[...] += jnp.concatenate(card_parts, axis=0)           # (C, L)


def _sublane_align(dtype):
    # Second-to-last block dim must be a multiple of the sublane packing
    # (8 for 4-byte, 16 for 2-byte, 32 for 1-byte dtypes) unless it spans the
    # full array dimension.
    return max(8, 32 // np.dtype(dtype).itemsize)


def enhanced_mixing_loss(logits_nchw, true_nhw, *, gamma=1.1, alpha=0.48,
                         smooth=1.0, eps=1e-7,
                         vmem_budget_bytes=20 * 1024 * 1024,
                         max_tile_rows=2048):
    N, C, H, W = logits_nchw.shape
    assert C == NUM_CLASSES

    # ---- lane-dense regroup of the trailing (H, W) dims (contiguous reshape,
    # no transpose): smallest g with (g*W) % 128 == 0 and H % g == 0. ----------
    g = 1
    if W % 128 != 0:
        g0 = 128 // math.gcd(W, 128)
        cand = g0
        while cand <= H:
            if H % cand == 0:
                g = cand
                break
            cand += g0
    L = g * W
    Hg = H // g

    logits_r = logits_nchw.reshape(N, C, Hg, L)        # native dtype, no upcast
    labels_r = true_nhw
    if not jnp.issubdtype(labels_r.dtype, jnp.integer):
        labels_r = labels_r.astype(jnp.int32)
    labels_r = labels_r.reshape(N, Hg, L)

    logit_ib = np.dtype(logits_r.dtype).itemsize
    label_ib = np.dtype(labels_r.dtype).itemsize
    row_align = max(_sublane_align(logits_r.dtype), _sublane_align(labels_r.dtype))

    # ---- row-tile size from a VMEM working-set budget that counts both the
    # double-buffered I/O blocks and the in-kernel f32 temporaries. ------------
    io_per_row = 2 * L * (C * logit_ib + label_ib)      # 2x double buffering
    tmp_per_row = (2 * C + 6) * L * 4                   # f32 in-kernel temporaries
    bytes_per_row = io_per_row + tmp_per_row
    budget_rows = min(int(max_tile_rows),
                      max(row_align, int(vmem_budget_bytes) // int(bytes_per_row)))
    if Hg <= budget_rows:
        tile_rows = Hg                                  # single full row tile
    else:
        tile_rows = max(row_align, (budget_rows // row_align) * row_align)
    num_tiles = pl.cdiv(Hg, tile_rows)

    # ---- N == 1: split the row-tile axis onto a leading "parallel" grid axis
    # so a megacore (v7x) still has two independent work streams. --------------
    split = 1
    if N == 1 and num_tiles >= 2:
        tr, nt = tile_rows, num_tiles
        while nt % 2 != 0 and tr > row_align:
            tr -= row_align
            nt = pl.cdiv(Hg, tr)
        if nt % 2 == 0:
            split, tile_rows, num_tiles = 2, tr, nt
    tiles_per_split = num_tiles // split
    needs_mask = (num_tiles * tile_rows) != Hg          # ragged last tile

    kernel = functools.partial(
        _partial_sums_kernel, num_classes=C, tile_rows=tile_rows,
        tiles_per_split=tiles_per_split, valid_rows=Hg,
        needs_mask=bool(needs_mask))

    npix = N * H * W
    cost = pl.CostEstimate(
        flops=25 * npix,
        transcendentals=(C + 1) * npix,
        bytes_accessed=int(npix * (C * logit_ib + label_ib)
                           + split * N * (2 * C + 1) * L * 4))

    tps = tiles_per_split
    inter_p, card_p, ce_p = pl.pallas_call(
        kernel,
        out_shape=(
            jax.ShapeDtypeStruct((split, N, C, L), jnp.float32),   # intersection
            jax.ShapeDtypeStruct((split, N, C, L), jnp.float32),   # cardinality
            jax.ShapeDtypeStruct((split, N, 1, L), jnp.float32),   # cross-entropy
        ),
        grid_spec=pltpu.PrefetchScalarGridSpec(
            num_scalar_prefetch=0,
            grid=(split, N, tiles_per_split),
            in_specs=[
                pl.BlockSpec((None, C, tile_rows, L),
                             lambda s, n, t: (n, 0, s * tps + t, 0)),
                pl.BlockSpec((None, tile_rows, L),
                             lambda s, n, t: (n, s * tps + t, 0)),
            ],
            out_specs=[
                pl.BlockSpec((None, None, C, L), lambda s, n, t: (s, n, 0, 0)),
                pl.BlockSpec((None, None, C, L), lambda s, n, t: (s, n, 0, 0)),
                pl.BlockSpec((None, None, 1, L), lambda s, n, t: (s, n, 0, 0)),
            ],
        ),
        compiler_params=pltpu.CompilerParams(
            dimension_semantics=("parallel", "parallel", "arbitrary"),
            vmem_limit_bytes=32 * 1024 * 1024),
        cost_estimate=cost,
    )(logits_r, labels_r)

    # ---- tiny scalar finalize in plain JAX ------------------------------------
    inter = jnp.sum(inter_p, axis=(0, 1))               # (C, L)
    card = jnp.sum(card_p, axis=(0, 1))                 # (C, L)
    if g > 1:
        inter = inter.reshape(C, g, W).sum(axis=1)      # fold lane groups -> (C, W)
        card = card.reshape(C, g, W).sum(axis=1)

    ce_mean = jnp.sum(ce_p) / float(npix)
    pt = jnp.exp(-ce_mean)
    focal = alpha * (1.0 - pt) ** gamma * ce_mean
    dice = jnp.mean((2.0 * inter + smooth) / (card + eps + smooth))
    return focal - jnp.log(1.0 - dice)


def reference_loss(logits, true, *, gamma=1.1, alpha=0.48, smooth=1.0, eps=1e-7):
    """Pure-JAX transcription of the PyTorch EnhancedMixingLoss forward."""
    logits = logits.astype(jnp.float32)
    logp = jax.nn.log_softmax(logits, axis=1)
    probas = jnp.exp(logp)
    onehot = jax.nn.one_hot(true, NUM_CLASSES, axis=1, dtype=jnp.float32)  # (N,C,H,W)
    ce = -jnp.sum(onehot * logp, axis=1)                                   # (N,H,W)
    ce_mean = jnp.mean(ce)
    pt = jnp.exp(-ce_mean)
    focal = alpha * (1.0 - pt) ** gamma * ce_mean
    # DiceLoss: dims = (0, 2) since true.ndim == 3
    inter = jnp.sum(probas * onehot, axis=(0, 2))                          # (C, W)
    card = jnp.sum(probas + onehot, axis=(0, 2))                           # (C, W)
    dice = jnp.mean((2.0 * inter + smooth) / (card + eps + smooth))
    return focal - jnp.log(1.0 - dice)


if __name__ == "__main__":
    key = jax.random.PRNGKey(0)
    k1, k2, k3, k4, k5, k6, k7, k8 = jax.random.split(key, 8)

    # Case 1: f32 logits / int32 labels; W=16 takes the lane packing path
    # (g = 8 H-rows folded into 128 lanes), single full row tile per image.
    N, C, H, W = 2, NUM_CLASSES, 16, 16
    logits = jax.random.normal(k1, (N, C, H, W), dtype=jnp.float32)
    true = jax.random.randint(k2, (N, H, W), 0, NUM_CLASSES, dtype=jnp.int32)
    loss = jax.block_until_ready(enhanced_mixing_loss(logits, true))
    ref = jax.block_until_ready(reference_loss(logits, true))
    np.testing.assert_allclose(np.asarray(loss), np.asarray(ref),
                               rtol=1e-4, atol=1e-5)

    # Case 2: multi-tile + ragged tail (Hg=20, tile_rows=8) forced by a tiny
    # VMEM budget — no jnp.pad copy, tail handled by the in-kernel mask.
    N2, H2, W2 = 2, 20, 128
    logits2 = jax.random.normal(k3, (N2, NUM_CLASSES, H2, W2), dtype=jnp.float32)
    true2 = jax.random.randint(k4, (N2, H2, W2), 0, NUM_CLASSES, dtype=jnp.int32)
    loss2 = jax.block_until_ready(
        enhanced_mixing_loss(logits2, true2, vmem_budget_bytes=32 * 1024))
    ref2 = jax.block_until_ready(reference_loss(logits2, true2))
    np.testing.assert_allclose(np.asarray(loss2), np.asarray(ref2),
                               rtol=1e-4, atol=1e-5)

    # Case 3: bf16 logits + int8 labels travel at native dtype (no wrapper
    # upcast) and generalized lane packing (W=48 -> g=8, L=384).
    N3, H3, W3 = 2, 16, 48
    logits3 = jax.random.normal(k5, (N3, NUM_CLASSES, H3, W3),
                                dtype=jnp.float32).astype(jnp.bfloat16)
    true3 = jax.random.randint(k6, (N3, H3, W3), 0, NUM_CLASSES,
                               dtype=jnp.int32).astype(jnp.int8)
    loss3 = jax.block_until_ready(enhanced_mixing_loss(logits3, true3))
    ref3 = jax.block_until_ready(reference_loss(logits3, true3.astype(jnp.int32)))
    np.testing.assert_allclose(np.asarray(loss3), np.asarray(ref3),
                               rtol=1e-4, atol=1e-5)

    # Case 4: single image (N=1) — the row-tile axis is split 2-way onto a
    # leading "parallel" grid axis so both TensorCores (v7x megacore) get work.
    N4, H4, W4 = 1, 32, 128
    logits4 = jax.random.normal(k7, (N4, NUM_CLASSES, H4, W4), dtype=jnp.float32)
    true4 = jax.random.randint(k8, (N4, H4, W4), 0, NUM_CLASSES, dtype=jnp.int32)
    loss4 = jax.block_until_ready(
        enhanced_mixing_loss(logits4, true4, vmem_budget_bytes=96 * 1024))
    ref4 = jax.block_until_ready(reference_loss(logits4, true4))
    np.testing.assert_allclose(np.asarray(loss4), np.asarray(ref4),
                               rtol=1e-4, atol=1e-5)

    print("KERNEL_OK")
</pallas_src>

<mosaic_0001>
module attributes {stable_mosaic.version = 11 : i64} {
  func.func @_partial_sums_kernel(%arg0: i32, %arg1: i32, %arg2: i32, %arg3: memref<1x3x2x128xf32, #tpu.memory_space<vmem>>, %arg4: memref<1x2x128xi32, #tpu.memory_space<vmem>>, %arg5: memref<1x1x3x128xf32, #tpu.memory_space<vmem>>, %arg6: memref<1x1x3x128xf32, #tpu.memory_space<vmem>>, %arg7: memref<1x1x1x128xf32, #tpu.memory_space<vmem>>) attributes {dimension_semantics = [#tpu.dimension_semantics<parallel>, #tpu.dimension_semantics<parallel>, #tpu.dimension_semantics<arbitrary>], iteration_bounds = array<i64: 1, 2, 1>, scalar_prefetch = 0 : i64, scratch_operands = 0 : i64, tpu.core_type = #tpu.core_type<tc>, window_params = [{transform_indices = @transform_0, window_bounds = array<i64: 1, 3, 2, 128>}, {transform_indices = @transform_1, window_bounds = array<i64: 1, 2, 128>}, {transform_indices = @transform_2, window_bounds = array<i64: 1, 1, 3, 128>}, {transform_indices = @transform_3, window_bounds = array<i64: 1, 1, 3, 128>}, {transform_indices = @transform_4, window_bounds = array<i64: 1, 1, 1, 128>}]} {
    %c0_i32 = arith.constant 0 : i32
    %0 = arith.cmpi eq, %arg2, %c0_i32 : i32
    %1 = arith.extui %0 : i1 to i32
    %c0_i32_0 = arith.constant 0 : i32
    %2 = arith.cmpi ne, %1, %c0_i32_0 : i32
    scf.if %2 {
      %cst_57 = arith.constant 0.000000e+00 : f32
      %107 = vector.broadcast %cst_57 : f32 to vector<3x128xf32>
      %c0_58 = arith.constant 0 : index
      %c0_59 = arith.constant 0 : index
      %c0_60 = arith.constant 0 : index
      %c0_61 = arith.constant 0 : index
      %108 = vector.load %arg5[%c0_58, %c0_59, %c0_60, %c0_61] : memref<1x1x3x128xf32, #tpu.memory_space<vmem>>, vector<1x1x3x128xf32>
      %109 = vector.shape_cast %108 : vector<1x1x3x128xf32> to vector<3x128xf32>
      %110 = vector.shape_cast %107 : vector<3x128xf32> to vector<1x1x3x128xf32>
      tpu.vector_store %arg5[%c0_58, %c0_59, %c0_60, %c0_61], %110 {strides = array<i32>} : memref<1x1x3x128xf32, #tpu.memory_space<vmem>>, vector<1x1x3x128xf32>,
      %cst_62 = arith.constant 0.000000e+00 : f32
      %111 = vector.broadcast %cst_62 : f32 to vector<3x128xf32>
      %c0_63 = arith.constant 0 : index
      %c0_64 = arith.constant 0 : index
      %c0_65 = arith.constant 0 : index
      %c0_66 = arith.constant 0 : index
      %112 = vector.load %arg6[%c0_63, %c0_64, %c0_65, %c0_66] : memref<1x1x3x128xf32, #tpu.memory_space<vmem>>, vector<1x1x3x128xf32>
      %113 = vector.shape_cast %112 : vector<1x1x3x128xf32> to vector<3x128xf32>
      %114 = vector.shape_cast %111 : vector<3x128xf32> to vector<1x1x3x128xf32>
      tpu.vector_store %arg6[%c0_63, %c0_64, %c0_65, %c0_66], %114 {strides = array<i32>} : memref<1x1x3x128xf32, #tpu.memory_space<vmem>>, vector<1x1x3x128xf32>,
      %cst_67 = arith.constant 0.000000e+00 : f32
      %115 = vector.broadcast %cst_67 : f32 to vector<1x128xf32>
      %c0_68 = arith.constant 0 : index
      %c0_69 = arith.constant 0 : index
      %c0_70 = arith.constant 0 : index
      %c0_71 = arith.constant 0 : index
      %116 = vector.load %arg7[%c0_68, %c0_69, %c0_70, %c0_71] : memref<1x1x1x128xf32, #tpu.memory_space<vmem>>, vector<1x1x1x128xf32>
      %117 = vector.shape_cast %116 : vector<1x1x1x128xf32> to vector<1x128xf32>
      %118 = vector.shape_cast %115 : vector<1x128xf32> to vector<1x1x1x128xf32>
      tpu.vector_store %arg7[%c0_68, %c0_69, %c0_70, %c0_71], %118 {strides = array<i32>} : memref<1x1x1x128xf32, #tpu.memory_space<vmem>>, vector<1x1x1x128xf32>,
    } else {
    }
    %c0 = arith.constant 0 : index
    %c0_1 = arith.constant 0 : index
    %c0_2 = arith.constant 0 : index
    %c0_3 = arith.constant 0 : index
    %3 = vector.load %arg3[%c0, %c0_1, %c0_2, %c0_3] : memref<1x3x2x128xf32, #tpu.memory_space<vmem>>, vector<1x3x2x128xf32>
    %4 = vector.shape_cast %3 : vector<1x3x2x128xf32> to vector<3x2x128xf32>
    %c0_4 = arith.constant 0 : index
    %c0_5 = arith.constant 0 : index
    %c0_6 = arith.constant 0 : index
    %5 = vector.load %arg4[%c0_4, %c0_5, %c0_6] : memref<1x2x128xi32, #tpu.memory_space<vmem>>, vector<1x2x128xi32>
    %6 = vector.shape_cast %5 : vector<1x2x128xi32> to vector<2x128xi32>
    %cst = arith.constant dense<0xFF800000> : vector<2x128xf32>
    %7 = vector.multi_reduction <maximumf>, %4, %cst [0] : vector<3x2x128xf32> to vector<2x128xf32>
    %8 = vector.shape_cast %7 : vector<2x128xf32> to vector<1x2x128xf32>
    %9 = vector.broadcast %8 : vector<1x2x128xf32> to vector<3x2x128xf32>
    %10 = arith.subf %4, %9 : vector<3x2x128xf32>
    %11 = math.exp %10 : vector<3x2x128xf32>
    %cst_7 = arith.constant dense<0.000000e+00> : vector<2x128xf32>
    %12 = vector.multi_reduction <add>, %11, %cst_7 [0] : vector<3x2x128xf32> to vector<2x128xf32>
    %cst_8 = arith.constant 1.000000e+00 : f32
    %13 = vector.broadcast %cst_8 : f32 to vector<2x128xf32>
    %14 = arith.divf %13, %12 : vector<2x128xf32>
    %15 = math.log %12 : vector<2x128xf32>
    %16 = arith.addf %15, %7 : vector<2x128xf32>
    %cst_9 = arith.constant 0.000000e+00 : f32
    %17 = vector.broadcast %cst_9 : f32 to vector<2x128xf32>
    %c0_i32_10 = arith.constant 0 : i32
    %18 = vector.broadcast %c0_i32_10 : i32 to vector<2x128xi32>
    %19 = arith.cmpi eq, %6, %18 : vector<2x128xi32>
    %20 = vector.extract_strided_slice %4 {offsets = [0, 0, 0], sizes = [1, 2, 128], strides = [1, 1, 1]} : vector<3x2x128xf32> to vector<1x2x128xf32>
    %21 = vector.shape_cast %20 : vector<1x2x128xf32> to vector<2x128xf32>
    %22 = arith.select %19, %21, %17 : vector<2x128xi1>, vector<2x128xf32>
    %c1_i32 = arith.constant 1 : i32
    %23 = vector.broadcast %c1_i32 : i32 to vector<2x128xi32>
    %24 = arith.cmpi eq, %6, %23 : vector<2x128xi32>
    %25 = vector.extract_strided_slice %4 {offsets = [1, 0, 0], sizes = [1, 2, 128], strides = [1, 1, 1]} : vector<3x2x128xf32> to vector<1x2x128xf32>
    %26 = vector.shape_cast %25 : vector<1x2x128xf32> to vector<2x128xf32>
    %27 = arith.select %24, %26, %22 : vector<2x128xi1>, vector<2x128xf32>
    %c2_i32 = arith.constant 2 : i32
    %28 = vector.broadcast %c2_i32 : i32 to vector<2x128xi32>
    %29 = arith.cmpi eq, %6, %28 : vector<2x128xi32>
    %30 = vector.extract_strided_slice %4 {offsets = [2, 0, 0], sizes = [1, 2, 128], strides = [1, 1, 1]} : vector<3x2x128xf32> to vector<1x2x128xf32>
    %31 = vector.shape_cast %30 : vector<1x2x128xf32> to vector<2x128xf32>
    %32 = arith.select %29, %31, %27 : vector<2x128xi1>, vector<2x128xf32>
    %33 = arith.subf %16, %32 : vector<2x128xf32>
    %c0_11 = arith.constant 0 : index
    %c0_12 = arith.constant 0 : index
    %c0_13 = arith.constant 0 : index
    %c0_14 = arith.constant 0 : index
    %34 = vector.load %arg7[%c0_11, %c0_12, %c0_13, %c0_14] : memref<1x1x1x128xf32, #tpu.memory_space<vmem>>, vector<1x1x1x128xf32>
    %35 = vector.shape_cast %34 : vector<1x1x1x128xf32> to vector<1x128xf32>
    %cst_15 = arith.constant dense<0.000000e+00> : vector<128xf32>
    %36 = vector.multi_reduction <add>, %33, %cst_15 [0] : vector<2x128xf32> to vector<128xf32>
    %37 = vector.shape_cast %36 : vector<128xf32> to vector<1x128xf32>
    %38 = arith.addf %35, %37 : vector<1x128xf32>
    %c0_16 = arith.constant 0 : index
    %c0_17 = arith.constant 0 : index
    %c0_18 = arith.constant 0 : index
    %c0_19 = arith.constant 0 : index
    %39 = vector.load %arg7[%c0_16, %c0_17, %c0_18, %c0_19] : memref<1x1x1x128xf32, #tpu.memory_space<vmem>>, vector<1x1x1x128xf32>
    %40 = vector.shape_cast %39 : vector<1x1x1x128xf32> to vector<1x128xf32>
    %41 = vector.shape_cast %38 : vector<1x128xf32> to vector<1x1x1x128xf32>
    tpu.vector_store %arg7[%c0_16, %c0_17, %c0_18, %c0_19], %41 {strides = array<i32>} : memref<1x1x1x128xf32, #tpu.memory_space<vmem>>, vector<1x1x1x128xf32>,
    %42 = vector.extract_strided_slice %11 {offsets = [0, 0, 0], sizes = [1, 2, 128], strides = [1, 1, 1]} : vector<3x2x128xf32> to vector<1x2x128xf32>
    %43 = vector.shape_cast %42 : vector<1x2x128xf32> to vector<2x128xf32>
    %44 = arith.mulf %43, %14 : vector<2x128xf32>
    %c0_i32_20 = arith.constant 0 : i32
    %45 = vector.broadcast %c0_i32_20 : i32 to vector<2x128xi32>
    %46 = arith.cmpi eq, %6, %45 : vector<2x128xi32>
    %cst_21 = arith.constant 0.000000e+00 : f32
    %47 = vector.broadcast %cst_21 : f32 to vector<2x128xf32>
    %48 = arith.select %46, %44, %47 : vector<2x128xi1>, vector<2x128xf32>
    %cst_22 = arith.constant dense<0.000000e+00> : vector<128xf32>
    %49 = vector.multi_reduction <add>, %48, %cst_22 [0] : vector<2x128xf32> to vector<128xf32>
    %50 = vector.shape_cast %49 : vector<128xf32> to vector<1x128xf32>
    %cst_23 = arith.constant dense<0.000000e+00> : vector<128xf32>
    %51 = vector.multi_reduction <add>, %44, %cst_23 [0] : vector<2x128xf32> to vector<128xf32>
    %52 = vector.shape_cast %51 : vector<128xf32> to vector<1x128xf32>
    %cst_24 = arith.constant 1.000000e+00 : f32
    %cst_25 = arith.constant 0.000000e+00 : f32
    %53 = vector.broadcast %cst_24 : f32 to vector<2x128xf32>
    %54 = vector.broadcast %cst_25 : f32 to vector<2x128xf32>
    %55 = arith.select %46, %53, %54 : vector<2x128xi1>, vector<2x128xf32>
    %cst_26 = arith.constant dense<0.000000e+00> : vector<128xf32>
    %56 = vector.multi_reduction <add>, %55, %cst_26 [0] : vector<2x128xf32> to vector<128xf32>
    %57 = vector.shape_cast %56 : vector<128xf32> to vector<1x128xf32>
    %58 = arith.addf %52, %57 : vector<1x128xf32>
    %59 = vector.extract_strided_slice %11 {offsets = [1, 0, 0], sizes = [1, 2, 128], strides = [1, 1, 1]} : vector<3x2x128xf32> to vector<1x2x128xf32>
    %60 = vector.shape_cast %59 : vector<1x2x128xf32> to vector<2x128xf32>
    %61 = arith.mulf %60, %14 : vector<2x128xf32>
    %c1_i32_27 = arith.constant 1 : i32
    %62 = vector.broadcast %c1_i32_27 : i32 to vector<2x128xi32>
    %63 = arith.cmpi eq, %6, %62 : vector<2x128xi32>
    %cst_28 = arith.constant 0.000000e+00 : f32
    %64 = vector.broadcast %cst_28 : f32 to vector<2x128xf32>
    %65 = arith.select %63, %61, %64 : vector<2x128xi1>, vector<2x128xf32>
    %cst_29 = arith.constant dense<0.000000e+00> : vector<128xf32>
    %66 = vector.multi_reduction <add>, %65, %cst_29 [0] : vector<2x128xf32> to vector<128xf32>
    %67 = vector.shape_cast %66 : vector<128xf32> to vector<1x128xf32>
    %cst_30 = arith.constant dense<0.000000e+00> : vector<128xf32>
    %68 = vector.multi_reduction <add>, %61, %cst_30 [0] : vector<2x128xf32> to vector<128xf32>
    %69 = vector.shape_cast %68 : vector<128xf32> to vector<1x128xf32>
    %cst_31 = arith.constant 1.000000e+00 : f32
    %cst_32 = arith.constant 0.000000e+00 : f32
    %70 = vector.broadcast %cst_31 : f32 to vector<2x128xf32>
    %71 = vector.broadcast %cst_32 : f32 to vector<2x128xf32>
    %72 = arith.select %63, %70, %71 : vector<2x128xi1>, vector<2x128xf32>
    %cst_33 = arith.constant dense<0.000000e+00> : vector<128xf32>
    %73 = vector.multi_reduction <add>, %72, %cst_33 [0] : vector<2x128xf32> to vector<128xf32>
    %74 = vector.shape_cast %73 : vector<128xf32> to vector<1x128xf32>
    %75 = arith.addf %69, %74 : vector<1x128xf32>
    %76 = vector.extract_strided_slice %11 {offsets = [2, 0, 0], sizes = [1, 2, 128], strides = [1, 1, 1]} : vector<3x2x128xf32> to vector<1x2x128xf32>
    %77 = vector.shape_cast %76 : vector<1x2x128xf32> to vector<2x128xf32>
    %78 = arith.mulf %77, %14 : vector<2x128xf32>
    %c2_i32_34 = arith.constant 2 : i32
    %79 = vector.broadcast %c2_i32_34 : i32 to vector<2x128xi32>
    %80 = arith.cmpi eq, %6, %79 : vector<2x128xi32>
    %cst_35 = arith.constant 0.000000e+00 : f32
    %81 = vector.broadcast %cst_35 : f32 to vector<2x128xf32>
    %82 = arith.select %80, %78, %81 : vector<2x128xi1>, vector<2x128xf32>
    %cst_36 = arith.constant dense<0.000000e+00> : vector<128xf32>
    %83 = vector.multi_reduction <add>, %82, %cst_36 [0] : vector<2x128xf32> to vector<128xf32>
    %84 = vector.shape_cast %83 : vector<128xf32> to vector<1x128xf32>
    %cst_37 = arith.constant dense<0.000000e+00> : vector<128xf32>
    %85 = vector.multi_reduction <add>, %78, %cst_37 [0] : vector<2x128xf32> to vector<128xf32>
    %86 = vector.shape_cast %85 : vector<128xf32> to vector<1x128xf32>
    %cst_38 = arith.constant 1.000000e+00 : f32
    %cst_39 = arith.constant 0.000000e+00 : f32
    %87 = vector.broadcast %cst_38 : f32 to vector<2x128xf32>
    %88 = vector.broadcast %cst_39 : f32 to vector<2x128xf32>
    %89 = arith.select %80, %87, %88 : vector<2x128xi1>, vector<2x128xf32>
    %cst_40 = arith.constant dense<0.000000e+00> : vector<128xf32>
    %90 = vector.multi_reduction <add>, %89, %cst_40 [0] : vector<2x128xf32> to vector<128xf32>
    %91 = vector.shape_cast %90 : vector<128xf32> to vector<1x128xf32>
    %92 = arith.addf %86, %91 : vector<1x128xf32>
    %c0_41 = arith.constant 0 : index
    %c0_42 = arith.constant 0 : index
    %c0_43 = arith.constant 0 : index
    %c0_44 = arith.constant 0 : index
    %93 = vector.load %arg5[%c0_41, %c0_42, %c0_43, %c0_44] : memref<1x1x3x128xf32, #tpu.memory_space<vmem>>, vector<1x1x3x128xf32>
    %94 = vector.shape_cast %93 : vector<1x1x3x128xf32> to vector<3x128xf32>
    %95 = tpu.concatenate %50, %67, %84 in 0 : vector<1x128xf32>, vector<1x128xf32>, vector<1x128xf32> -> vector<3x128xf32>
    %96 = arith.addf %94, %95 : vector<3x128xf32>
    %c0_45 = arith.constant 0 : index
    %c0_46 = arith.constant 0 : index
    %c0_47 = arith.constant 0 : index
    %c0_48 = arith.constant 0 : index
    %97 = vector.load %arg5[%c0_45, %c0_46, %c0_47, %c0_48] : memref<1x1x3x128xf32, #tpu.memory_space<vmem>>, vector<1x1x3x128xf32>
    %98 = vector.shape_cast %97 : vector<1x1x3x128xf32> to vector<3x128xf32>
    %99 = vector.shape_cast %96 : vector<3x128xf32> to vector<1x1x3x128xf32>
    tpu.vector_store %arg5[%c0_45, %c0_46, %c0_47, %c0_48], %99 {strides = array<i32>} : memref<1x1x3x128xf32, #tpu.memory_space<vmem>>, vector<1x1x3x128xf32>,
    %c0_49 = arith.constant 0 : index
    %c0_50 = arith.constant 0 : index
    %c0_51 = arith.constant 0 : index
    %c0_52 = arith.constant 0 : index
    %100 = vector.load %arg6[%c0_49, %c0_50, %c0_51, %c0_52] : memref<1x1x3x128xf32, #tpu.memory_space<vmem>>, vector<1x1x3x128xf32>
    %101 = vector.shape_cast %100 : vector<1x1x3x128xf32> to vector<3x128xf32>
    %102 = tpu.concatenate %58, %75, %92 in 0 : vector<1x128xf32>, vector<1x128xf32>, vector<1x128xf32> -> vector<3x128xf32>
    %103 = arith.addf %101, %102 : vector<3x128xf32>
    %c0_53 = arith.constant 0 : index
    %c0_54 = arith.constant 0 : index
    %c0_55 = arith.constant 0 : index
    %c0_56 = arith.constant 0 : index
    %104 = vector.load %arg6[%c0_53, %c0_54, %c0_55, %c0_56] : memref<1x1x3x128xf32, #tpu.memory_space<vmem>>, vector<1x1x3x128xf32>
    %105 = vector.shape_cast %104 : vector<1x1x3x128xf32> to vector<3x128xf32>
    %106 = vector.shape_cast %103 : vector<3x128xf32> to vector<1x1x3x128xf32>
    tpu.vector_store %arg6[%c0_53, %c0_54, %c0_55, %c0_56], %106 {strides = array<i32>} : memref<1x1x3x128xf32, #tpu.memory_space<vmem>>, vector<1x1x3x128xf32>,
    return
  }
  func.func @transform_0(%arg0: i32, %arg1: i32, %arg2: i32) -> (i32, i32, i32, i32) {
    %c1_i32 = arith.constant 1 : i32
    %0 = arith.muli %arg0, %c1_i32 : i32
    %1 = arith.addi %0, %arg2 : i32
    %c0_i32 = arith.constant 0 : i32
    %c0_i32_0 = arith.constant 0 : i32
    %c0_i32_1 = arith.constant 0 : i32
    return %arg1, %c0_i32, %1, %c0_i32_0 : i32, i32, i32, i32
  }
  func.func @transform_1(%arg0: i32, %arg1: i32, %arg2: i32) -> (i32, i32, i32) {
    %c1_i32 = arith.constant 1 : i32
    %0 = arith.muli %arg0, %c1_i32 : i32
    %1 = arith.addi %0, %arg2 : i32
    %c0_i32 = arith.constant 0 : i32
    %c0_i32_0 = arith.constant 0 : i32
    return %arg1, %1, %c0_i32 : i32, i32, i32
  }
  func.func @transform_2(%arg0: i32, %arg1: i32, %arg2: i32) -> (i32, i32, i32, i32) {
    %c0_i32 = arith.constant 0 : i32
    %c0_i32_0 = arith.constant 0 : i32
    %c0_i32_1 = arith.constant 0 : i32
    return %arg0, %arg1, %c0_i32, %c0_i32_0 : i32, i32, i32, i32
  }
  func.func @transform_3(%arg0: i32, %arg1: i32, %arg2: i32) -> (i32, i32, i32, i32) {
    %c0_i32 = arith.constant 0 : i32
    %c0_i32_0 = arith.constant 0 : i32
    %c0_i32_1 = arith.constant 0 : i32
    return %arg0, %arg1, %c0_i32, %c0_i32_0 : i32, i32, i32, i32
  }
  func.func @transform_4(%arg0: i32, %arg1: i32, %arg2: i32) -> (i32, i32, i32, i32) {
    %c0_i32 = arith.constant 0 : i32
    %c0_i32_0 = arith.constant 0 : i32
    %c0_i32_1 = arith.constant 0 : i32
    return %arg0, %arg1, %c0_i32, %c0_i32_0 : i32, i32, i32, i32
  }
}

</mosaic_0001>

<bundles_post_ra>
// kernel: tpu_custom_call.1
= control target key start
LH: loop header
LB: loop body
LE: loop exit
PB: predicated region body
PF: predicated region fallthrough
CT: control target
= control target key end

     0   :  { %10 = vsyncpa [#allocation3], 0  ;;  %s1234_s0 = inlined_call_operand.hbm [shape: f32[2,3,2,128], index: 0, kind: input, shape index: {}]   ;;  %s1235_s1 = inlined_call_operand.hbm [shape: s32[2,2,128], index: 1, kind: input, shape index: {}]   ;;  %s1236_s2 = inlined_call_operand.vmem [shape: f32[1,2,3,128], index: 2, kind: output, shape index: {0}]   ;;  %s1237_s3 = inlined_call_operand.vmem [shape: f32[1,2,3,128], index: 3, kind: output, shape index: {1}]   ;;  %s1238_s4 = inlined_call_operand.hbm [shape: f32[1,2,1,128], index: 4, kind: output, shape index: {2}]  }
   0x1   :  { %12 = vsyncpa [#allocation3 + $0x1], 0 }
   0x2   :  { %13 = vsyncpa [#allocation6], 0 }
   0x3   :  { %15 = vsyncpa [#allocation6 + $0x1], 0 }
   0x4   :  { %16 = vsyncpa [#allocation4], 0 }
   0x5   :  { %18 = vsyncpa [#allocation4 + $0x1], 0  ;;  %s959_s15 = smov 0   ;;  %s961_s16 = smov 0  }
   0x6   :  { %s963_s17 = smov 0   ;;  %s965_s18 = smov 0  }
   0x7   :  { %s967_s19 = smov 0   ;;  %s969_s20 = smov 0  }
   0x8 LB: > { %s683_s21 = sadd.s32 4294967295, %s926_s20   ;;  %s684_s22 = sadd.s32 4294967294, %s926_s20   ;;  %s926_s20 = sphi %s969_s20, %s24_s20   ;;  %s922_s19 = sphi %s967_s19, %s1257_s19   ;;  %s918_s18 = sphi %s965_s18, %s1256_s18   ;;  %s914_s17 = sphi %s963_s17, %s1255_s17   ;;  %s910_s16 = sphi %s961_s16, %s1254_s16   ;;  %s906_s15 = sphi %s959_s15, %s1253_s15  }
   0x9   : > { %s39_s23 = sadd.s32 1, %s922_s19  ;;  %s54_s24 = sadd.s32 1, %s914_s17 }
   0xa   : > { %p41_p0 = scmp.ge.s32.totalorder %s39_s23, 2  ;;  %p61_p1 = scmp.ne.s32.totalorder %s914_s17, %s910_s16 }
   0xb   : > { %p62_p2 = scmp.eq.s32.totalorder %s926_s20, 0  ;;  %p67_p3 = scmp.ne.s32.totalorder %s910_s16, %s906_s15 }
   0xc   : > { %s1259_s23 = smov (%p41_p0, %s39_s23), 0  ;;  %p68_p5 = scmp.eq.s32.totalorder %s683_s21, 0 }
   0xd   : > { %p1000_p4 = por %p62_p2, %p61_p1  ;;  %s49_s26 = ssub.s32 %s922_s19, %s1259_s23 }
   0xe   : > { %p179_p6 = scmp.eq.s32.totalorder %s683_s21, 1  ;;  %p52_p7 = scmp.eq.s32.totalorder %s49_s26, 0 }
   0xf   : > { %p1006_p8 = por %p68_p5, %p67_p3  ;;  %p185_p10 = scmp.eq.s32.totalorder %s684_s22, 1 }
  0x10   : > { %p1010_p9 = por %p179_p6, %p61_p1  ;;  %p717_p13 = scmp.lt.s32.totalorder %s926_s20, 2 }
  0x11   : > { %s1242_s27 = scalar_select %p1006_p8, 1, 0 }
  0x12   : > { %s1243_s28 = scalar_select %p1010_p9, 1, 0 }
  0x13   : > { %s1015_s29 = scalar_select %p52_p7, %s914_s17, %s54_s24  }
  0x14   : > { %p1017_p11 = por %p185_p10, %p67_p3  ;;  %s1024_s5 = sand.u32 1, %s914_s17  }
  0x15   : > { %s697_s6 = smul.u32 6, %s1024_s5  ;;  %p1030_p0 = pnand %p717_p13, %p1000_p4 }
  0x16   : > { %s1244_s30 = scalar_select %p1017_p11, 1, 0 }
  0x17   : > { %s698_s7 = smul.u32 96, %s922_s19  ;;  %s209_s12 = scalar_lea.vmem [#allocation2], %s697_s6 }
  0x18   : > { %s218_s13 = sshll.u32 %s209_s12, 4  ;;  %s206_s14 = scalar_lea.sflag [#allocation3], %s1024_s5  ;;  %s1039_s13 = int_to_ptr.vmem [resolvable:$true] %s218_s13 }
  0x19   : > { %s1037_s11 = scalar_lea.hbm %s1234_s0, %s698_s7  ;;  %p782_p3 = pneg %p1030_p0 }
  0x1a   : > { %s780_s21 = scalar_lea.hbm %s1037_s11, 96  ;;  %s785_s25 = scalar_lea.hbm %s1234_s0, 192 }
  0x1b   : > { %p781_p2 = scmp.ne.s32.totalorder %s1037_s11, %s780_s21  ;;  %p786_p6 = scmp.lt.u32.totalorder %s1037_s11, %s1234_s0 }
  0x1c   : > { %p787_p7 = scmp.lt.u32.totalorder %s785_s25, %s780_s21  ;;  %p789_p13 = scmp.lt.u32.totalorder %s780_s21, %s1037_s11 }
  0x1d   : > { %p783_p4 = pnand %p782_p3, %p781_p2 }
  0x1e   : > { %p788_p10 = por %p787_p7, %p786_p6 }
  0x1f   : > { %p784_p5 = pneg %p783_p4 }
  0x20   : > { %p790_p12 = por %p789_p13, %p788_p10 }
  0x22   : > { %p791_p1 = pnand %p790_p12, %p784_p5 }
  0x24   : > { %794 = shalt.err (!%p791_p1)
}
  0x25   : > { %s795_s6 = scalar_lea.vmem %s1039_s13, 96  ;;  %s928_s9 = smov [#allocation2]  }
  0x26   : > { %p796_p2 = scmp.ne.s32.totalorder %s1039_s13, %s795_s6  ;;  %s800_s10 = sshll.u32 %s928_s9, 4  ;;  %s801_s10 = int_to_ptr.vmem [resolvable:$false] %s800_s10 }
  0x27   : > { %s802_s12 = scalar_lea.vmem %s801_s10, 192  ;;  %p803_p9 = scmp.lt.s32.totalorder %s1039_s13, %s801_s10 }
  0x28   : > { %p798_p4 = pnand %p796_p2, %p782_p3  ;;  %p804_p6 = scmp.lt.s32.totalorder %s802_s12, %s795_s6 }
  0x2a   : > { %p799_p11 = pneg %p798_p4  ;;  %p805_p7 = por %p804_p6, %p803_p9 }
  0x2c   : > { %p806_p10 = pnand %p805_p7, %p799_p11 }
  0x2e   : > { %809 = shalt.err (!%p806_p10)
}
  0x2f   : > { %s929_s21 = smov 32   ;;  %s930_s22 = smov 2  }
  0x30   : > { %709 = dma.hbm_to_vmem [thread:$0]  (!%p1030_p0), %s1037_s11, 96, %s1039_s13, %s206_s14, %s929_s21, %s929_s21, %s930_s22  }
  0x31   : > { %p246_p12 = scmp.lt.s32.totalorder %s926_s20, 3  ;;  %s688_s24 = sshll.u32 %s1024_s5, 1 }
  0x32   : > { %s689_s25 = sshll.u32 %s922_s19, 5  ;;  %p1246_p9 = scmp.ge.s32.totalorder %s926_s20, 1 }
  0x33   : > { %s1082_s9 = scalar_lea.hbm %s1235_s1, %s689_s25  ;;  %s232_s10 = scalar_lea.vmem [#allocation5], %s688_s24 }
  0x34   : > { %p1075_p11 = pnand %p1246_p9, %p246_p12  ;;  %s241_s12 = sshll.u32 %s232_s10, 4  ;;  %s242_s12 = int_to_ptr.vmem [resolvable:$true] %s241_s12 }
  0x35   : > { %s229_s11 = scalar_lea.sflag [#allocation6], %s1024_s5  ;;  %s810_s13 = scalar_lea.hbm %s1082_s9, 32 }
  0x36   : > { %s1247_s26 = scalar_select %p1075_p11, 1, 0 }
  0x37   : > { %p811_p1 = scmp.ne.s32.totalorder %s1082_s9, %s810_s13  ;;  %s815_s22 = scalar_lea.hbm %s1235_s1, 64 }
  0x38   : > { %p816_p2 = scmp.lt.u32.totalorder %s1082_s9, %s1235_s1  ;;  %p817_p4 = scmp.lt.u32.totalorder %s815_s22, %s810_s13 }
  0x39   : > { %p813_p5 = pnand %p811_p1, %p782_p3  ;;  %p819_p7 = scmp.lt.u32.totalorder %s810_s13, %s1082_s9 }
  0x3a   : > { %p818_p6 = por %p817_p4, %p816_p2 }
  0x3b   : > { %p814_p13 = pneg %p813_p5 }
  0x3c   : > { %p820_p10 = por %p819_p7, %p818_p6 }
  0x3e   : > { %p821_p12 = pnand %p820_p10, %p814_p13 }
  0x40   : > { %824 = shalt.err (!%p821_p12)
}
  0x41   : > { %s825_s5 = scalar_lea.vmem %s242_s12, 32  ;;  %s931_s24 = smov [#allocation5]  }
  0x42   : > { %p826_p9 = scmp.ne.s32.totalorder %s242_s12, %s825_s5  ;;  %s830_s6 = sshll.u32 %s931_s24, 4  ;;  %s831_s6 = int_to_ptr.vmem [resolvable:$false] %s830_s6 }
  0x43   : > { %s832_s10 = scalar_lea.vmem %s831_s6, 64  ;;  %p833_p8 = scmp.lt.s32.totalorder %s242_s12, %s831_s6 }
  0x44   : > { %p828_p1 = pnand %p826_p9, %p782_p3  ;;  %p834_p11 = scmp.lt.s32.totalorder %s832_s10, %s825_s5 }
  0x46   : > { %p829_p5 = pneg %p828_p1  ;;  %p835_p2 = por %p834_p11, %p833_p8 }
  0x48   : > { %p836_p4 = pnand %p835_p2, %p829_p5 }
  0x4a   : > { %839 = shalt.err (!%p836_p4)
}
  0x4b   : > { %712 = dma.hbm_to_vmem [thread:$0]  (!%p1030_p0), %s1082_s9, 32, %s242_s12, %s229_s11  }
  0x4c   : > { %p1248_p13 = scmp.ne.s32.totalorder %s1247_s26, 0 }
  0x4d   : > { %s1107_s13 = sand.u32 (!%p1248_p13), 1, %s910_s16   ;;  %p1249_p3 = scmp.ne.s32.totalorder (!%p1248_p13), %s1242_s27, 0 }
  0x4e   : > { %250 = sbr.rel (%p1248_p13) target bundleno = 167 (0xa7), region = 28  ;;  %s253_s21 = scalar_lea.sflag (!%p1248_p13), [#allocation3], %s1107_s13 }
  0x4f   : > { %s699_s14 = smul.u32 (!%p1248_p13), 6, %s1107_s13 }
  0x51   : > { %s256_s22 = scalar_lea.vmem (!%p1248_p13), [#allocation2], %s699_s14 }
  0x55   : > { %893 = dma.done.wait (%p1249_p3), %s253_s21, 96  }
  0x56   : > { %895 = vsyncadd (%p1249_p3), %s253_s21, 4294967200  ;;  %s691_s8 = sshll.u32 %s1107_s13, 1  ;;  %s262_s26 = scalar_lea.sflag [#allocation6], %s1107_s13 }
  0x57   : > { %s265_s9 = scalar_lea.vmem [#allocation5], %s691_s8 }
  0x58   : > { %897 = dma.done.wait (%p1249_p3), %s262_s26, 32  }
  0x59   : > { %899 = vsyncadd (%p1249_p3), %s262_s26, 4294967264  ;;  %p314_p8 = scmp.lt.s32.totalorder %s918_s18, 1  ;;  %s1123_s12 = scalar_lea.vmem [#allocation7], %s1107_s13  ;;  %v932_v0 = vmov 0.0   ;;  %vm339_vm0 = vcmask 1041408   ;;  %vm457_vm4 = vcmask 1040384  }
  0x5a   : > { %334 = vst [vmem:[%s1123_s12] sm:$0x1] %v932_v0  ;;  %v335_v1 = vld [vmem:[%s256_s22] sm:$0x3]  ;;  %v336_v2 = vld [vmem:[%s256_s22 + $0x2] sm:$0x3]  ;;  %s694_s14 = sshll.u32 %s918_s18, 4 }
  0x5b   : > { %s315_s11 = scalar_select %p314_p8, %s918_s18, 1  ;;  %v337_v3 = vld [vmem:[%s256_s22 + $0x4] sm:$0x3]  ;;  %v340_v4 = vsel %vm339_vm0, %v335_v1, -inf  ;;  %v341_v5 = vsel %vm339_vm0, %v336_v2, -inf }
  0x5c   : > { %v342_v6 = vsel %vm339_vm0, %v337_v3, -inf  ;;  %v343_v7 = vmax.f32 %v340_v4, %v341_v5  ;;  %v338_v15 = vld [vmem:[%s265_s9] sm:$0x3]  ;;  %s504_s21 = sshll.u32 %s1123_s12, 4  ;;  %s1184_s26 = scalar_lea.hbm %s1238_s4, %s694_s14  ;;  %s1186_s21 = int_to_ptr.vmem [resolvable:$true] %s504_s21 }
  0x5d   : > { %s692_s25 = sshll.u32 %s315_s11, 2  ;;  %vm364_vm1 = vcmp.eq.s32.totalorder %v338_v15, 0  ;;  %vm366_vm2 = vcmp.eq.s32.totalorder %v338_v15, 1  ;;  %vm368_vm3 = vcmp.eq.s32.totalorder %v338_v15, 2  ;;  %s484_s9 = scalar_lea.sflag [#allocation4], %s1107_s13 }
  0x5e   : > { %s1130_s24 = scalar_lea.vmem %s1236_s2, %s692_s25  ;;  %s1135_s10 = scalar_lea.vmem %s1237_s3, %s692_s25  ;;  %v1142_v8 = vmax.f32 %v343_v7, %v342_v6  ;;  %v397_v16 = vsel %vm364_vm1, 1.0, %v932_v0  ;;  %v422_v17 = vsel %vm366_vm2, 1.0, %v932_v0  ;;  %v447_v22 = vsel %vm368_vm3, 1.0, %v932_v0 }
  0x5f   : > { %332 = vst [vmem:[%s1130_s24] sm:$0x7] %v932_v0  ;;  %333 = vst [vmem:[%s1135_s10] sm:$0x7] %v932_v0  ;;  %v398_v19 = vsel %vm339_vm0, %v397_v16, 0.0  ;;  %v423_v20 = vsel %vm339_vm0, %v422_v17, 0.0  ;;  %v448_v30 = vsel %vm339_vm0, %v447_v22, 0.0  ;;  %v365_v38 = vsel %vm364_vm1, %v335_v1, 0.0 }
  0x60   : > { %v345_v9 = vsub.f32 %v335_v1, %v1142_v8  ;;  %v346_v10 = vsub.f32 %v336_v2, %v1142_v8  ;;  %v347_v11 = vsub.f32 %v337_v3, %v1142_v8  ;;  %v399_v26 = vrot.slane %v398_v19, 4  ;;  %s840_s11 = scalar_lea.vmem %s1186_s21, 16  ;;  %p1250_p11 = scmp.ne.s32.totalorder %s1243_s28, 0 }
  0x61   : > { %v424_v27 = vrot.slane %v423_v20, 4  ;;  %v449_v34 = vrot.slane %v448_v30, 4  ;;  %v367_v42 = vsel %vm366_vm2, %v336_v2, %v365_v38  ;;  %p841_p0 = scmp.ne.s32.totalorder %s1186_s21, %s840_s11  ;;  %s933_s18 = smov [#allocation7]  }
  0x62   : > { %v348_v12 = vmul.f32 1.442695, %v345_v9  ;;  %v350_v13 = vmul.f32 1.442695, %v346_v10  ;;  %v352_v14 = vmul.f32 1.442695, %v347_v11  ;;  %v400_v32 = vadd.f32 %v399_v26, %v398_v19 }
  0x63   : > { %v425_v33 = vadd.f32 %v424_v27, %v423_v20  ;;  %v450_v37 = vadd.f32 %v449_v34, %v448_v30  ;;  %v369_v48 = vsel %vm368_vm3, %v337_v3, %v367_v42  ;;  %p842_p6 = pnand %p841_p0, %p1250_p11  ;;  %s844_s25 = sshll.u32 %s933_s18, 4  ;;  %s845_s25 = int_to_ptr.vmem [resolvable:$false] %s844_s25 }
  0x64   : > { %770 = vpow2.f32 %v348_v12  ;;  %v401_v35 = vrot.slane %v400_v32, 2  ;;  %s846_s7 = scalar_lea.vmem %s845_s25, 32  ;;  %p847_p10 = scmp.lt.s32.totalorder %s1186_s21, %s845_s25 }
  0x65   : > { %772 = vpow2.f32 %v350_v13  ;;  %v426_v36 = vrot.slane %v425_v33, 2  ;;  %v451_v41 = vrot.slane %v450_v37, 2  ;;  %p843_p7 = pneg %p842_p6  ;;  %p848_p12 = scmp.lt.s32.totalorder %s846_s7, %s840_s11 }
  0x66   : > { %774 = vpow2.f32 %v352_v14  ;;  %v402_v39 = vadd.f32 %v401_v35, %v400_v32  ;;  %v456_v42 = vld [vmem:[%s1130_s24] sm:$0x7] }
  0x67   : > { %v427_v40 = vadd.f32 %v426_v36, %v425_v33  ;;  %v452_v51 = vadd.f32 %v451_v41, %v450_v37  ;;  %p849_p9 = por %p848_p12, %p847_p10 }
  0x68   : > { %v403_v49 = vrot.slane %v402_v39, 1 }
  0x69   : > { %v428_v50 = vrot.slane %v427_v40, 1  ;;  %v453_v20 = vrot.slane %v452_v51, 1  ;;  %p850_p1 = pnand %p849_p9, %p843_p7 }
  0x6a   : > { %v404_v11 = vadd.f32 %v403_v49, %v402_v39 }
  0x6b   : > { %v429_v27 = vadd.f32 %v428_v50, %v427_v40  ;;  %v454_v35 = vadd.f32 %v453_v20, %v452_v51 }
  0x6e   : > { %v771_v18 = vpop.eup %770 }
  0x6f   : > { %v773_v21 = vpop.eup %772  ;;  %v354_v23 = vsel %vm339_vm0, %v771_v18, 0.0 }
  0x70   : > { %v775_v24 = vpop.eup %774  ;;  %v355_v25 = vsel %vm339_vm0, %v773_v21, 0.0 }
  0x71   : > { %v356_v28 = vadd.f32 %v355_v25, %v354_v23  ;;  %v357_v29 = vsel %vm339_vm0, %v775_v24, 0.0 }
  0x73   : > { %v358_v31 = vadd.f32 %v357_v29, %v356_v28 }
  0x75   : > { %776 = vrcp.f32 %v358_v31 }
  0x76   : > { %778 = vlog2.f32 %v358_v31 }
  0x7f   : > { %v777_v43 = vpop.eup %776 }
  0x80   : > { %v779_v44 = vpop.eup %778  ;;  %v381_v45 = vmul.f32 %v777_v43, %v771_v18  ;;  %v406_v46 = vmul.f32 %v777_v43, %v773_v21  ;;  %v431_v47 = vmul.f32 %v777_v43, %v775_v24 }
  0x81   : > { %v362_v52 = vmul.f32 0.6931472, %v779_v44 }
  0x82   : > { %v382_v53 = vsel %vm364_vm1, %v381_v45, 0.0  ;;  %v407_v54 = vsel %vm366_vm2, %v406_v46, 0.0  ;;  %v432_v55 = vsel %vm368_vm3, %v431_v47, 0.0  ;;  %v390_v56 = vsel %vm339_vm0, %v381_v45, 0.0 }
  0x83   : > { %v383_v57 = vsel %vm339_vm0, %v382_v53, 0.0  ;;  %v408_v58 = vsel %vm339_vm0, %v407_v54, 0.0  ;;  %v433_v59 = vsel %vm339_vm0, %v432_v55, 0.0  ;;  %v391_v60 = vrot.slane %v390_v56, 4 }
  0x84   : > { %v384_v61 = vrot.slane %v383_v57, 4  ;;  %v409_v62 = vrot.slane %v408_v58, 4  ;;  %v434_v63 = vrot.slane %v433_v59, 4  ;;  %v415_v0 = vsel %vm339_vm0, %v406_v46, 0.0 }
  0x85   : > { %v392_v1 = vadd.f32 %v391_v60, %v390_v56  ;;  %v416_v2 = vrot.slane %v415_v0, 4  ;;  %v440_v3 = vsel %vm339_vm0, %v431_v47, 0.0  ;;  %v363_v4 = vadd.f32 %v362_v52, %v1142_v8  ;;  %v462_v52 = vld [vmem:[%s1135_s10] sm:$0x7] }
  0x86   : > { %v385_v5 = vadd.f32 %v384_v61, %v383_v57  ;;  %v410_v6 = vadd.f32 %v409_v62, %v408_v58  ;;  %v435_v7 = vadd.f32 %v434_v63, %v433_v59  ;;  %v441_v9 = vrot.slane %v440_v3, 4  ;;  %v371_v56 = vld [vmem:[%s1123_s12] sm:$0x1] }
  0x87   : > { %v393_v10 = vrot.slane %v392_v1, 2  ;;  %v417_v12 = vadd.f32 %v416_v2, %v415_v0  ;;  %v370_v13 = vsub.f32 %v363_v4, %v369_v48 }
  0x88   : > { %v386_v14 = vrot.slane %v385_v5, 2  ;;  %v411_v15 = vrot.slane %v410_v6, 2  ;;  %v436_v16 = vrot.slane %v435_v7, 2  ;;  %v442_v17 = vadd.f32 %v441_v9, %v440_v3 }
  0x89   : > { %v394_v18 = vadd.f32 %v393_v10, %v392_v1  ;;  %v418_v19 = vrot.slane %v417_v12, 2  ;;  %v372_v21 = vsel %vm339_vm0, %v370_v13, 0.0 }
  0x8a   : > { %v387_v22 = vadd.f32 %v386_v14, %v385_v5  ;;  %v412_v23 = vadd.f32 %v411_v15, %v410_v6  ;;  %v437_v8 = vadd.f32 %v436_v16, %v435_v7  ;;  %v443_v24 = vrot.slane %v442_v17, 2 }
  0x8b   : > { %v395_v25 = vrot.slane %v394_v18, 1  ;;  %v419_v26 = vadd.f32 %v418_v19, %v417_v12  ;;  %v373_v28 = vrot.slane %v372_v21, 4 }
  0x8c   : > { %v388_v29 = vrot.slane %v387_v22, 1  ;;  %v413_v30 = vrot.slane %v412_v23, 1  ;;  %v438_v31 = vrot.slane %v437_v8, 1  ;;  %v444_v32 = vadd.f32 %v443_v24, %v442_v17 }
  0x8d   : > { %v396_v33 = vadd.f32 %v395_v25, %v394_v18  ;;  %v420_v34 = vrot.slane %v419_v26, 1  ;;  %v374_v36 = vadd.f32 %v373_v28, %v372_v21 }
  0x8e   : > { %v389_v37 = vadd.f32 %v388_v29, %v387_v22  ;;  %v414_v38 = vadd.f32 %v413_v30, %v412_v23  ;;  %v439_v39 = vadd.f32 %v438_v31, %v437_v8  ;;  %v445_v41 = vrot.slane %v444_v32, 1 }
  0x8f   : > { %v405_v43 = vadd.f32 %v404_v11, %v396_v33  ;;  %v421_v40 = vadd.f32 %v420_v34, %v419_v26  ;;  %v375_v44 = vrot.slane %v374_v36, 2 }
  0x90   : > { %v458_v45 = vsel %vm457_vm4, %v389_v37, %v414_v38  ;;  %v446_v46 = vadd.f32 %v445_v41, %v444_v32 }
  0x91   : > { %v459_v47 = vsel %vm339_vm0, %v458_v45, %v439_v39  ;;  %v430_v48 = vadd.f32 %v429_v27, %v421_v40  ;;  %v376_v49 = vadd.f32 %v375_v44, %v374_v36 }
  0x92   : > { %v460_v50 = vadd.f32 %v459_v47, %v456_v42  ;;  %v455_v51 = vadd.f32 %v454_v35, %v446_v46 }
  0x93   : > { %v463_v53 = vsel %vm457_vm4, %v405_v43, %v430_v48  ;;  %v377_v54 = vrot.slane %v376_v49, 1 }
  0x94   : > { %461 = vst [vmem:[%s1130_s24] sm:$0x7] %v460_v50  ;;  %v464_v55 = vsel %vm339_vm0, %v463_v53, %v455_v51 }
  0x95   : > { %v465_v57 = vadd.f32 %v464_v55, %v462_v52  ;;  %v378_v58 = vadd.f32 %v377_v54, %v376_v49 }
  0x97   : > { %466 = vst [vmem:[%s1135_s10] sm:$0x7] %v465_v57  ;;  %v379_v59 = vadd.f32 %v378_v58, %v371_v56 }
  0x99   : > { %380 = vst [vmem:[%s1123_s12] sm:$0x1] %v379_v59 }
  0x9a   : > { %853 = shalt.err (!%p850_p1)
}
  0x9b   : > { %s854_s13 = scalar_lea.hbm %s1184_s26, 16  ;;  %s858_s24 = scalar_lea.hbm %s1238_s4, 32 }
  0x9c   : > { %p855_p5 = scmp.ne.s32.totalorder %s1184_s26, %s854_s13  ;;  %p859_p13 = scmp.lt.u32.totalorder %s1184_s26, %s1238_s4 }
  0x9d   : > { %p860_p3 = scmp.lt.u32.totalorder %s858_s24, %s854_s13  ;;  %p862_p0 = scmp.lt.u32.totalorder %s854_s13, %s1184_s26 }
  0x9e   : > { %p856_p2 = pnand %p855_p5, %p1250_p11 }
  0x9f   : > { %p861_p8 = por %p860_p3, %p859_p13 }
  0xa0   : > { %p857_p4 = pneg %p856_p2 }
  0xa1   : > { %p863_p6 = por %p862_p0, %p861_p8 }
  0xa3   : > { %p864_p7 = pnand %p863_p6, %p857_p4 }
  0xa5   : > { %867 = shalt.err (!%p864_p7)
}
  0xa6   : > { %704 = dma.vmem_to_hbm [thread:$0]  (%p1250_p11), %s1186_s21, 16, %s1184_s26, %s484_s9  }
  0xa7 PF: > { %s538_s10 = sand.u32 1, %s906_s15   ;;  %p1251_p10 = scmp.ne.s32.totalorder %s1244_s30, 0 }
  0xa8   : > { %p1252_p12 = scmp.ge.s32.totalorder %s926_s20, 2  ;;  %s539_s14 = scalar_lea.sflag [#allocation4], %s538_s10 }
  0xaa   : > { %p714_p9 = pnand %p1252_p12, %p1251_p10 }
  0xac   : > { %901 = dma.done.wait (!%p714_p9), %s539_s14, 16  }
  0xad   : > { %903 = vsyncadd (!%p714_p9), %s539_s14, 4294967280  ;;  %s24_s20 = sadd.s32 1, %s926_s20   ;;  %s1253_s15 = smov %s910_s16 }
  0xae   : > { %p21_p1 = scmp.ge.s32.totalorder %s24_s20, 4   ;;  %s1254_s16 = smov %s914_s17 }
  0xaf   : > { %s1255_s17 = smov %s1015_s29  ;;  %s1256_s18 = smov %s922_s19 }
  0xb0   : > { %s1257_s19 = smov %s1259_s23  ;;  %23 = sbr.rel (!%p21_p1) target bundleno = 8 (0x8), region = 114 }
  0xb7   :  { %543 = vsyncpa [#allocation3], 1 }
  0xb8   :  { %545 = vsyncpa [#allocation3 + $0x1], 1 }
  0xb9   :  { %546 = vsyncpa [#allocation6], 1 }
  0xba   :  { %548 = vsyncpa [#allocation6 + $0x1], 1 }
  0xbb   :  { %549 = vsyncpa [#allocation4], 1 }
  0xbc   :  { %551 = vsyncpa [#allocation4 + $0x1], 1 }

</bundles_post_ra>
